<compile_context>
chip_gen: v7x
topology: tpu7x:2x2x1
jax: 0.10.0
libtpu: 0.0.40
codegen_flags: <defaults>
</compile_context>

<pallas_src>
import functools

import jax
import jax.numpy as jnp
from jax.experimental import pallas as pl
from jax.experimental.pallas import tpu as pltpu


def _layernorm_kernel(x_ref, g_ref, b_ref, o_ref, *, eps):
    # x_ref:  (nb, C, S_tile, 128) or (nb, C, T)
    # g_ref/b_ref: (1, C, 1, 1)    or (1, C, 1)
    # The reduction is over axis=1 (channels) only; every other position is
    # independent, so values in masked boundary positions stay confined there.
    x = x_ref[...].astype(jnp.float32)
    mean = jnp.mean(x, axis=1, keepdims=True)
    xm = x - mean
    var = jnp.mean(xm * xm, axis=1, keepdims=True)   # biased variance
    inv = 1.0 / (var + eps)                          # divide on reduced shape only
    g = g_ref[...].astype(jnp.float32)
    b = b_ref[...].astype(jnp.float32)
    o_ref[...] = (xm * inv * g + b).astype(o_ref.dtype)


def _pick_units(total, bytes_per_unit, quantum, target_bytes):
    """Block extent along one axis: the full `total`, or the largest multiple
    of `quantum` whose byte footprint stays under `target_bytes`."""
    if total <= quantum or total * bytes_per_unit <= target_bytes:
        return int(total)
    units = max(1, target_bytes // (bytes_per_unit * quantum))
    return int(min(units, total // quantum) * quantum)


def layernorm_nchw(x, g, b, eps=1e-5):
    """x: (N, C, H, W), g/b: (1, C, 1, 1). Returns (N, C, H, W)."""
    N, C, H, W = x.shape
    HW = H * W
    itemsize = jnp.dtype(x.dtype).itemsize

    # Size blocks / scoped VMEM from the actual part (v7x has 64 MiB per TC).
    try:
        vmem_cap = pltpu.get_tpu_info().vmem_capacity_bytes
    except Exception:  # pragma: no cover - conservative fallback (v7x sizing)
        vmem_cap = 64 << 20
    target = min(max(vmem_cap // 32, 1 << 20), 4 << 20)   # ~1-4 MiB input block
    vmem_limit = min(vmem_cap // 2, 64 << 20)

    kernel = functools.partial(_layernorm_kernel, eps=eps)
    cost = pl.CostEstimate(
        flops=8 * N * C * HW,
        transcendentals=0,
        bytes_accessed=2 * N * C * HW * itemsize + 2 * C * jnp.dtype(g.dtype).itemsize,
    )

    if HW % 128 == 0:
        # 4-D layout (N, C, S, 128): channels sit above the (sublane, lane)
        # tile -> no sublane padding when C is small; reduce stays on the VPU.
        S = HW // 128
        xk = x.reshape(N, C, S, 128)
        gk = g.reshape(1, C, 1, 1)
        bk = b.reshape(1, C, 1, 1)
        bytes_per_s = C * 128 * itemsize
        s_tile = _pick_units(S, bytes_per_s, 8, target)
        per_row = s_tile * bytes_per_s
        nb = max(1, min(N, int(target // max(per_row, 1))))
        grid = (pl.cdiv(N, nb), pl.cdiv(S, s_tile))
        x_spec = pl.BlockSpec((nb, C, s_tile, 128), lambda n, s: (n, 0, s, 0))
        p_spec = pl.BlockSpec((1, C, 1, 1), lambda n, s: (0, 0, 0, 0))
        out_shape = jax.ShapeDtypeStruct((N, C, S, 128), x.dtype)
    else:
        # 3-D fallback (N, C, HW): tile the lane axis in multiples of 128 and
        # let Pallas mask the single ragged boundary block (no pad/slice HBM
        # round-trips in the wrapper).
        xk = x.reshape(N, C, HW)
        gk = g.reshape(1, C, 1)
        bk = b.reshape(1, C, 1)
        bytes_per_lane = C * itemsize
        hw_tile = _pick_units(HW, bytes_per_lane, 128, target)
        per_row = hw_tile * bytes_per_lane
        nb = max(1, min(N, int(target // max(per_row, 1))))
        grid = (pl.cdiv(N, nb), pl.cdiv(HW, hw_tile))
        x_spec = pl.BlockSpec((nb, C, hw_tile), lambda n, h: (n, 0, h))
        p_spec = pl.BlockSpec((1, C, 1), lambda n, h: (0, 0, 0))
        out_shape = jax.ShapeDtypeStruct((N, C, HW), x.dtype)

    out = pl.pallas_call(
        kernel,
        out_shape=out_shape,
        grid_spec=pltpu.PrefetchScalarGridSpec(
            num_scalar_prefetch=0,
            grid=grid,
            in_specs=[x_spec, p_spec, p_spec],
            out_specs=x_spec,
        ),
        compiler_params=pltpu.CompilerParams(
            # Both grid axes are independent; "parallel" lets v7x shard the
            # many-step axis across its two TensorCores (no-op on v5e/v6e).
            dimension_semantics=("parallel", "parallel"),
            vmem_limit_bytes=vmem_limit,
        ),
        cost_estimate=cost,
    )(xk, gk, bk)

    return out.reshape(N, C, H, W)


if __name__ == "__main__":
    key = jax.random.PRNGKey(0)
    kx, kg, kb = jax.random.split(key, 3)
    N, C, H, W = 2, 4, 16, 16
    x = jax.random.normal(kx, (N, C, H, W), dtype=jnp.float32)

    # Deterministic affine params (perturbed from the module's ones/zeros init
    # so the g/b broadcast paths are actually exercised).
    g = 1.0 + 0.1 * jax.random.normal(kg, (1, C, 1, 1), dtype=jnp.float32)
    b = 0.1 * jax.random.normal(kb, (1, C, 1, 1), dtype=jnp.float32)

    out = layernorm_nchw(x, g, b, eps=1e-5)
    out = jax.block_until_ready(out)

    # Reference check in plain JAX (same non-sqrt formula as the PyTorch module).
    mean = jnp.mean(x, axis=1, keepdims=True)
    var = jnp.mean((x - mean) ** 2, axis=1, keepdims=True)
    ref = (x - mean) / (var + 1e-5) * g + b
    assert jnp.allclose(out, ref, atol=1e-5, rtol=1e-5), "mismatch vs reference"

    print("KERNEL_OK")
</pallas_src>

<mosaic_0001>
module attributes {stable_mosaic.version = 11 : i64} {
  func.func @_layernorm_kernel(%arg0: i32, %arg1: i32, %arg2: memref<2x4x2x128xf32, #tpu.memory_space<vmem>>, %arg3: memref<1x4x1x1xf32, #tpu.memory_space<vmem>>, %arg4: memref<1x4x1x1xf32, #tpu.memory_space<vmem>>, %arg5: memref<2x4x2x128xf32, #tpu.memory_space<vmem>>) attributes {dimension_semantics = [#tpu.dimension_semantics<parallel>, #tpu.dimension_semantics<parallel>], iteration_bounds = array<i64: 1, 1>, scalar_prefetch = 0 : i64, scratch_operands = 0 : i64, tpu.core_type = #tpu.core_type<tc>, window_params = [{transform_indices = @transform_0, window_bounds = array<i64: 2, 4, 2, 128>}, {pipeline_mode = #tpu.pipeline_mode<synchronous>, transform_indices = @transform_1, window_bounds = array<i64: 1, 4, 1, 1>}, {pipeline_mode = #tpu.pipeline_mode<synchronous>, transform_indices = @transform_2, window_bounds = array<i64: 1, 4, 1, 1>}, {transform_indices = @transform_3, window_bounds = array<i64: 2, 4, 2, 128>}]} {
    %c0 = arith.constant 0 : index
    %c0_0 = arith.constant 0 : index
    %c0_1 = arith.constant 0 : index
    %c0_2 = arith.constant 0 : index
    %0 = vector.load %arg2[%c0, %c0_0, %c0_1, %c0_2] : memref<2x4x2x128xf32, #tpu.memory_space<vmem>>, vector<2x4x2x128xf32>
    %cst = arith.constant dense<0.000000e+00> : vector<2x2x128xf32>
    %1 = vector.multi_reduction <add>, %0, %cst [1] : vector<2x4x2x128xf32> to vector<2x2x128xf32>
    %2 = vector.shape_cast %1 : vector<2x2x128xf32> to vector<2x1x2x128xf32>
    %cst_3 = arith.constant 4.000000e+00 : f32
    %3 = vector.broadcast %cst_3 : f32 to vector<2x1x2x128xf32>
    %4 = arith.divf %2, %3 : vector<2x1x2x128xf32>
    %5 = vector.broadcast %4 : vector<2x1x2x128xf32> to vector<2x4x2x128xf32>
    %6 = arith.subf %0, %5 : vector<2x4x2x128xf32>
    %7 = arith.mulf %6, %6 : vector<2x4x2x128xf32>
    %cst_4 = arith.constant dense<0.000000e+00> : vector<2x2x128xf32>
    %8 = vector.multi_reduction <add>, %7, %cst_4 [1] : vector<2x4x2x128xf32> to vector<2x2x128xf32>
    %9 = vector.shape_cast %8 : vector<2x2x128xf32> to vector<2x1x2x128xf32>
    %cst_5 = arith.constant 4.000000e+00 : f32
    %10 = vector.broadcast %cst_5 : f32 to vector<2x1x2x128xf32>
    %11 = arith.divf %9, %10 : vector<2x1x2x128xf32>
    %cst_6 = arith.constant 9.99999974E-6 : f32
    %12 = vector.broadcast %cst_6 : f32 to vector<2x1x2x128xf32>
    %13 = arith.addf %11, %12 : vector<2x1x2x128xf32>
    %cst_7 = arith.constant 1.000000e+00 : f32
    %14 = vector.broadcast %cst_7 : f32 to vector<2x1x2x128xf32>
    %15 = arith.divf %14, %13 : vector<2x1x2x128xf32>
    %c0_8 = arith.constant 0 : index
    %c0_9 = arith.constant 0 : index
    %c0_10 = arith.constant 0 : index
    %c0_11 = arith.constant 0 : index
    %16 = vector.load %arg3[%c0_8, %c0_9, %c0_10, %c0_11] : memref<1x4x1x1xf32, #tpu.memory_space<vmem>>, vector<1x4x1x1xf32>
    %c0_12 = arith.constant 0 : index
    %c0_13 = arith.constant 0 : index
    %c0_14 = arith.constant 0 : index
    %c0_15 = arith.constant 0 : index
    %17 = vector.load %arg4[%c0_12, %c0_13, %c0_14, %c0_15] : memref<1x4x1x1xf32, #tpu.memory_space<vmem>>, vector<1x4x1x1xf32>
    %18 = vector.broadcast %15 : vector<2x1x2x128xf32> to vector<2x4x2x128xf32>
    %19 = arith.mulf %6, %18 : vector<2x4x2x128xf32>
    %20 = vector.broadcast %16 : vector<1x4x1x1xf32> to vector<2x4x2x128xf32>
    %21 = arith.mulf %19, %20 : vector<2x4x2x128xf32>
    %22 = vector.broadcast %17 : vector<1x4x1x1xf32> to vector<2x4x2x128xf32>
    %23 = arith.addf %21, %22 : vector<2x4x2x128xf32>
    %c0_16 = arith.constant 0 : index
    %c0_17 = arith.constant 0 : index
    %c0_18 = arith.constant 0 : index
    %c0_19 = arith.constant 0 : index
    %24 = vector.load %arg5[%c0_16, %c0_17, %c0_18, %c0_19] : memref<2x4x2x128xf32, #tpu.memory_space<vmem>>, vector<2x4x2x128xf32>
    tpu.vector_store %arg5[%c0_16, %c0_17, %c0_18, %c0_19], %23 {strides = array<i32>} : memref<2x4x2x128xf32, #tpu.memory_space<vmem>>, vector<2x4x2x128xf32>,
    return
  }
  func.func @transform_0(%arg0: i32, %arg1: i32) -> (i32, i32, i32, i32) {
    %c0_i32 = arith.constant 0 : i32
    %c0_i32_0 = arith.constant 0 : i32
    %c0_i32_1 = arith.constant 0 : i32
    return %arg0, %c0_i32, %arg1, %c0_i32_0 : i32, i32, i32, i32
  }
  func.func @transform_1(%arg0: i32, %arg1: i32) -> (i32, i32, i32, i32) {
    %c0_i32 = arith.constant 0 : i32
    %c0_i32_0 = arith.constant 0 : i32
    %c0_i32_1 = arith.constant 0 : i32
    %c0_i32_2 = arith.constant 0 : i32
    %c0_i32_3 = arith.constant 0 : i32
    return %c0_i32, %c0_i32_0, %c0_i32_1, %c0_i32_2 : i32, i32, i32, i32
  }
  func.func @transform_2(%arg0: i32, %arg1: i32) -> (i32, i32, i32, i32) {
    %c0_i32 = arith.constant 0 : i32
    %c0_i32_0 = arith.constant 0 : i32
    %c0_i32_1 = arith.constant 0 : i32
    %c0_i32_2 = arith.constant 0 : i32
    %c0_i32_3 = arith.constant 0 : i32
    return %c0_i32, %c0_i32_0, %c0_i32_1, %c0_i32_2 : i32, i32, i32, i32
  }
  func.func @transform_3(%arg0: i32, %arg1: i32) -> (i32, i32, i32, i32) {
    %c0_i32 = arith.constant 0 : i32
    %c0_i32_0 = arith.constant 0 : i32
    %c0_i32_1 = arith.constant 0 : i32
    return %arg0, %c0_i32, %arg1, %c0_i32_0 : i32, i32, i32, i32
  }
}

</mosaic_0001>

<bundles_post_ra>
// kernel: tpu_custom_call.1
= control target key start
LH: loop header
LB: loop body
LE: loop exit
PB: predicated region body
PF: predicated region fallthrough
CT: control target
= control target key end

     0   :  { %8 = vsyncpa [#allocation3], 0  ;;  %s384_s0 = inlined_call_operand.hbm [shape: f32[2,4,2,128], index: 0, kind: input, shape index: {}]   ;;  %s385_s1 = inlined_call_operand.vmem [shape: f32[1,4,1,1], index: 1, kind: input, shape index: {}]   ;;  %s386_s2 = inlined_call_operand.vmem [shape: f32[1,4,1,1], index: 2, kind: input, shape index: {}]   ;;  %s387_s3 = inlined_call_operand.hbm [shape: f32[2,4,2,128], index: 3, kind: output, shape index: {}]  }
   0x1   :  { %9 = vsyncpa [#allocation4], 0  ;;  %s289_s12 = smov [#allocation2]   ;;  %s241_s16 = scalar_lea.hbm %s384_s0, 256 }
   0x2   :  { %s15_s13 = sshll.u32 %s289_s12, 4  ;;  %p242_p0 = scmp.ne.s32.totalorder %s384_s0, %s241_s16  ;;  %s16_s13 = int_to_ptr.vmem [resolvable:$true] %s15_s13 }
   0x3   :  { %p245_p1 = scmp.lt.u32.totalorder %s241_s16, %s384_s0 }
   0x5   :  { %p247_p2 = pnand %p245_p1, %p242_p0 }
   0x7   :  { %250 = shalt.err (!%p247_p2)
}
   0x8   :  { %s251_s21 = scalar_lea.vmem %s16_s13, 256  ;;  %p256_p4 = scmp.lt.s32.totalorder %s16_s13, %s16_s13 }
   0x9   :  { %p252_p3 = scmp.ne.s32.totalorder %s16_s13, %s251_s21  ;;  %p257_p5 = scmp.lt.s32.totalorder %s251_s21, %s251_s21 }
   0xb   :  { %p258_p6 = por %p257_p5, %p256_p4 }
   0xd   :  { %p259_p7 = pnand %p258_p6, %p252_p3 }
   0xf   :  { %262 = shalt.err (!%p259_p7)
}
  0x10   :  { %s290_s22 = smov 32   ;;  %s291_s23 = smov 2  }
  0x11   :  { %21 = dma.hbm_to_vmem [thread:$0]  %s384_s0, 256, %s16_s13, [#allocation3], %s290_s22, %s290_s22, %s291_s23  }
  0x12   :  { %285 = dma.done.wait [#allocation3], 256  }
  0x13   :  { %286 = vsyncadd [#allocation3], 4294967040  ;;  %v292_v0 = vmov 0   ;;  %v224_v1 = vld [vmem:[%s385_s1 + $0x2] ss:$0 sm:$0xff]  ;;  %vm37_vm0 = vcmask 1041408  }
  0x14   :  { %236 = vset.pattern.permute.xlu1 %v292_v0  ;;  %235 = vset.pattern.permute.xlu0 %v292_v0  ;;  %v222_v2 = vld [vmem:[%s385_s1] ss:$0 sm:$0xff]  ;;  %v225_v3 = vld [vmem:[%s385_s1 + $0x3] ss:$0 sm:$0xff]  ;;  %v223_v4 = vld [vmem:[%s385_s1 + $0x1] ss:$0 sm:$0xff] }
  0x15   :  { %138 = vperm.xlu1 %236, %v224_v1   ;;  %130 = vperm.xlu0 %235, %v222_v2   ;;  %v227_v5 = vld [vmem:[%s386_s2 + $0x1] ss:$0 sm:$0xff]  ;;  %v226_v6 = vld [vmem:[%s386_s2] ss:$0 sm:$0xff]  ;;  %v229_v7 = vld [vmem:[%s386_s2 + $0x3] ss:$0 sm:$0xff] }
  0x16   :  { %v228_v8 = vld [vmem:[%s386_s2 + $0x2] ss:$0 sm:$0xff]  ;;  %v29_v9 = vld [vmem:[#allocation2] sm:$0x3]  ;;  %v33_v11 = vld [vmem:[#allocation2 + $0x8] sm:$0x3] }
  0x17   :  { %v30_v10 = vld [vmem:[#allocation2 + $0x2] sm:$0x3]  ;;  %v34_v12 = vld [vmem:[#allocation2 + $0xa] sm:$0x3]  ;;  %v38_v13 = vsel %vm37_vm0, %v29_v9, 0.0  ;;  %v45_v16 = vsel %vm37_vm0, %v33_v11, 0.0 }
  0x18   :  { %v39_v14 = vsel %vm37_vm0, %v30_v10, 0.0  ;;  %v31_v15 = vld [vmem:[#allocation2 + $0x4] sm:$0x3]  ;;  %v46_v17 = vsel %vm37_vm0, %v34_v12, 0.0  ;;  %v35_v18 = vld [vmem:[#allocation2 + $0xc] sm:$0x3] }
  0x19   :  { %142 = vperm.xlu1 %236, %v225_v3   ;;  %134 = vperm.xlu0 %235, %v223_v4   ;;  %v40_v19 = vadd.f32 %v39_v14, %v38_v13  ;;  %v41_v20 = vsel %vm37_vm0, %v31_v15, 0.0  ;;  %v47_v21 = vadd.f32 %v46_v17, %v45_v16  ;;  %v32_v22 = vld [vmem:[#allocation2 + $0x6] sm:$0x3]  ;;  %v48_v23 = vsel %vm37_vm0, %v35_v18, 0.0  ;;  %v36_v24 = vld [vmem:[#allocation2 + $0xe] sm:$0x3] }
  0x1a   :  { %v43_v26 = vsel %vm37_vm0, %v32_v22, 0.0  ;;  %v50_v28 = vsel %vm37_vm0, %v36_v24, 0.0  ;;  %s293_s1 = smov [#allocation5]  }
  0x1b   :  { %v42_v25 = vadd.f32 %v41_v20, %v40_v19  ;;  %v49_v27 = vadd.f32 %v48_v23, %v47_v21  ;;  %s210_s2 = sshll.u32 %s293_s1, 4  ;;  %s211_s2 = int_to_ptr.vmem [resolvable:$true] %s210_s2 }
  0x1c   :  { %s263_s14 = scalar_lea.vmem %s211_s2, 256  ;;  %p268_p9 = scmp.lt.s32.totalorder %s211_s2, %s211_s2 }
  0x1d   :  { %178 = vperm.xlu1 %236, %v227_v5   ;;  %174 = vperm.xlu0 %235, %v226_v6   ;;  %v44_v29 = vadd.f32 %v43_v26, %v42_v25  ;;  %v51_v30 = vadd.f32 %v50_v28, %v49_v27  ;;  %p264_p8 = scmp.ne.s32.totalorder %s211_s2, %s263_s14  ;;  %p269_p10 = scmp.lt.s32.totalorder %s263_s14, %s263_s14 }
  0x1f   :  { %v53_v31 = vmul.f32 0.25, %v44_v29  ;;  %v54_v32 = vmul.f32 0.25, %v51_v30  ;;  %p270_p11 = por %p269_p10, %p268_p9 }
  0x21   :  { %186 = vperm.xlu1 %236, %v229_v7   ;;  %182 = vperm.xlu0 %235, %v228_v8   ;;  %v55_v33 = vsub.f32 %v29_v9, %v53_v31  ;;  %v56_v34 = vsub.f32 %v30_v10, %v53_v31  ;;  %v59_v35 = vsub.f32 %v33_v11, %v54_v32  ;;  %p271_p12 = pnand %p270_p11, %p264_p8 }
  0x22   :  { %v60_v36 = vsub.f32 %v34_v12, %v54_v32  ;;  %v57_v37 = vsub.f32 %v31_v15, %v53_v31  ;;  %v61_v40 = vsub.f32 %v35_v18, %v54_v32  ;;  %v58_v43 = vsub.f32 %v32_v22, %v53_v31 }
  0x23   :  { %v63_v38 = vmul.f32 %v55_v33, %v55_v33  ;;  %v64_v39 = vmul.f32 %v56_v34, %v56_v34  ;;  %v67_v41 = vmul.f32 %v59_v35, %v59_v35  ;;  %v62_v47 = vsub.f32 %v36_v24, %v54_v32 }
  0x24   :  { %v68_v42 = vmul.f32 %v60_v36, %v60_v36  ;;  %v65_v44 = vmul.f32 %v57_v37, %v57_v37  ;;  %v69_v48 = vmul.f32 %v61_v40, %v61_v40  ;;  %v66_v52 = vmul.f32 %v58_v43, %v58_v43 }
  0x25   :  { %v71_v45 = vsel %vm37_vm0, %v63_v38, 0.0  ;;  %v72_v46 = vsel %vm37_vm0, %v64_v39, 0.0  ;;  %v78_v49 = vsel %vm37_vm0, %v67_v41, 0.0  ;;  %v70_v55 = vmul.f32 %v62_v47, %v62_v47 }
  0x26   :  { %v79_v50 = vsel %vm37_vm0, %v68_v42, 0.0  ;;  %v73_v51 = vadd.f32 %v72_v46, %v71_v45  ;;  %v74_v53 = vsel %vm37_vm0, %v65_v44, 0.0  ;;  %v81_v56 = vsel %vm37_vm0, %v69_v48, 0.0 }
  0x27   :  { %v80_v54 = vadd.f32 %v79_v50, %v78_v49  ;;  %v76_v58 = vsel %vm37_vm0, %v66_v52, 0.0  ;;  %v83_v60 = vsel %vm37_vm0, %v70_v55, 0.0 }
  0x28   :  { %v75_v57 = vadd.f32 %v74_v53, %v73_v51 }
  0x29   :  { %v82_v59 = vadd.f32 %v81_v56, %v80_v54 }
  0x2a   :  { %v77_v61 = vadd.f32 %v76_v58, %v75_v57 }
  0x2b   :  { %v84_v62 = vadd.f32 %v83_v60, %v82_v59 }
  0x2c   :  { %v85_v63 = vmul.f32 0.25, %v77_v61 }
  0x2d   :  { %v86_v0 = vmul.f32 0.25, %v84_v62 }
  0x2e   :  { %v87_v1 = vadd.f32 1e-05, %v85_v63 }
  0x2f   :  { %v88_v2 = vadd.f32 1e-05, %v86_v0 }
  0x30   :  { %237 = vrcp.f32 %v87_v1 }
  0x31   :  { %239 = vrcp.f32 %v88_v2 }
  0x3a   :  { %v238_v3 = vpop.eup %237 }
  0x3b   :  { %v240_v4 = vpop.eup %239  ;;  %v101_v7 = vmul.f32 %v238_v3, %v55_v33  ;;  %v102_v9 = vmul.f32 %v238_v3, %v56_v34  ;;  %v103_v13 = vmul.f32 %v238_v3, %v57_v37  ;;  %v104_v15 = vmul.f32 %v238_v3, %v58_v43 }
  0x3c   :  { %v105_v8 = vmul.f32 %v240_v4, %v59_v35  ;;  %v106_v10 = vmul.f32 %v240_v4, %v60_v36  ;;  %v107_v14 = vmul.f32 %v240_v4, %v61_v40  ;;  %v108_v16 = vmul.f32 %v240_v4, %v62_v47 }
  0x94   :  { %v139_v5 = vpop.permute.xlu1 %138  ;;  %v131_v6 = vpop.permute.xlu0 %130 }
  0x95   :  { %v145_v17 = vmul.f32 %v131_v6, %v101_v7  ;;  %v149_v18 = vmul.f32 %v131_v6, %v105_v8  ;;  %v147_v27 = vmul.f32 %v139_v5, %v103_v13  ;;  %v151_v28 = vmul.f32 %v139_v5, %v107_v14 }
  0x98   :  { %v143_v11 = vpop.permute.xlu1 %142  ;;  %v135_v12 = vpop.permute.xlu0 %134 }
  0x99   :  { %v146_v19 = vmul.f32 %v135_v12, %v102_v9  ;;  %v150_v20 = vmul.f32 %v135_v12, %v106_v10  ;;  %v148_v29 = vmul.f32 %v143_v11, %v104_v15  ;;  %v152_v30 = vmul.f32 %v143_v11, %v108_v16 }
  0x9c   :  { %v179_v21 = vpop.permute.xlu1 %178  ;;  %v175_v22 = vpop.permute.xlu0 %174 }
  0x9d   :  { %v190_v23 = vadd.f32 %v179_v21, %v146_v19  ;;  %v194_v24 = vadd.f32 %v179_v21, %v150_v20  ;;  %v189_v25 = vadd.f32 %v175_v22, %v145_v17  ;;  %v193_v26 = vadd.f32 %v175_v22, %v149_v18 }
  0x9f   :  { %198 = vst [vmem:[#allocation5 + $0x2] sm:$0x3] %v190_v23  ;;  %202 = vst [vmem:[#allocation5 + $0xa] sm:$0x3] %v194_v24 }
  0xa0   :  { %197 = vst [vmem:[#allocation5] sm:$0x3] %v189_v25  ;;  %201 = vst [vmem:[#allocation5 + $0x8] sm:$0x3] %v193_v26  ;;  %v187_v31 = vpop.permute.xlu1 %186  ;;  %v183_v32 = vpop.permute.xlu0 %182 }
  0xa1   :  { %v192_v33 = vadd.f32 %v187_v31, %v148_v29  ;;  %v196_v34 = vadd.f32 %v187_v31, %v152_v30  ;;  %v191_v35 = vadd.f32 %v183_v32, %v147_v27  ;;  %v195_v36 = vadd.f32 %v183_v32, %v151_v28 }
  0xa3   :  { %200 = vst [vmem:[#allocation5 + $0x6] sm:$0x3] %v192_v33  ;;  %204 = vst [vmem:[#allocation5 + $0xe] sm:$0x3] %v196_v34 }
  0xa4   :  { %199 = vst [vmem:[#allocation5 + $0x4] sm:$0x3] %v191_v35  ;;  %203 = vst [vmem:[#allocation5 + $0xc] sm:$0x3] %v195_v36 }
  0xa5   :  { %274 = shalt.err (!%p271_p12)
}
  0xa6   :  { %s275_s17 = scalar_lea.hbm %s387_s3, 256 }
  0xa7   :  { %p276_p13 = scmp.ne.s32.totalorder %s387_s3, %s275_s17  ;;  %p279_p0 = scmp.lt.u32.totalorder %s275_s17, %s387_s3 }
  0xa9   :  { %p281_p1 = pnand %p279_p0, %p276_p13 }
  0xab   :  { %284 = shalt.err (!%p281_p1)
}
  0xac   :  { %216 = dma.vmem_to_hbm [thread:$0]  %s211_s2, 256, %s387_s3, [#allocation4], %s290_s22, %s290_s22, %s291_s23  }
  0xad   :  { %287 = dma.done.wait [#allocation4], 256  }
  0xae   :  { %288 = vsyncadd [#allocation4], 4294967040 }
  0xaf   :  { %220 = vsyncpa [#allocation3], 1 }
  0xb0   :  { %221 = vsyncpa [#allocation4], 1 }

</bundles_post_ra>
